<compile_context>
chip_gen: v7x
topology: tpu7x:2x2x1
jax: 0.10.0
libtpu: 0.0.40
codegen_flags: <defaults>
</compile_context>

<pallas_src>
import jax
import jax.numpy as jnp
from jax.experimental import pallas as pl
from jax.experimental.pallas import tpu as pltpu

HID = 100            # nn.Linear(state_dim/action_dim, 100)
HID_PAD = 128        # hidden width padded to one full lane group
PAIR_PAD = 2 * HID_PAD  # 256: [even-row hidden | odd-row hidden], lane-dense
MID = 8              # block3 nn.Linear(200, 8)
MID_PAD = 128        # block3 hidden padded to lane width
MAX_TILE_ROWS = 512  # paired rows per grid step (keeps VMEM use tiny on v7x)


def _head(x, w_in, b_in, w3, b3, w4, b4):
    """Linear+ReLU (paired), Linear+ReLU, Linear — all in VMEM, f32 accumulate."""
    h1 = jnp.maximum(jnp.dot(x, w_in, preferred_element_type=jnp.float32) + b_in, 0.0)
    h2 = jnp.maximum(jnp.dot(h1, w3, preferred_element_type=jnp.float32) + b3, 0.0)
    return jnp.dot(h2, w4, preferred_element_type=jnp.float32) + b4


def _fused_kernel(s_ref, a_ref, w1_ref, b1_ref, w2_ref, b2_ref,
                  w3_ref, b3_ref, w4_ref, b4_ref, o_ref):
    # Dropout layers are identity in eval mode.
    w3, b3 = w3_ref[...], b3_ref[...]
    w4, b4 = w4_ref[...], b4_ref[...]
    # out rows 0..B/2-1 come from state-row pairs, rows B/2..B-1 from action-row
    # pairs (this is exactly what torch.cat(dim=0).reshape(-1, 200) produces).
    o_ref[0] = _head(s_ref[...], w1_ref[...], b1_ref[...], w3, b3, w4, b4)
    o_ref[1] = _head(a_ref[...], w2_ref[...], b2_ref[...], w3, b3, w4, b4)


def prepare_params(raw):
    """One-time weight repack: transpose, zero-pad to 128 lanes, and fold the
    cat/reshape row pairing into block-diagonal first-layer weights."""
    W1, b1 = raw["W1"], raw["b1"]   # (100, Ds), (100,)
    W2, b2 = raw["W2"], raw["b2"]   # (100, Da), (100,)
    W3, b3 = raw["W3"], raw["b3"]   # (8, 200),  (8,)
    W4, b4 = raw["W4"], raw["b4"]   # (1, 8),    (1,)
    Ds, Da = W1.shape[1], W2.shape[1]

    def pair_in(W, b, d):
        # (2d, 256): rows 0..d-1 feed the "even row" hidden copy (lanes 0..99),
        # rows d..2d-1 feed the "odd row" hidden copy (lanes 128..227).
        Wp = jnp.zeros((2 * d, PAIR_PAD), jnp.float32)
        Wp = Wp.at[:d, :HID].set(W.T)
        Wp = Wp.at[d:, HID_PAD:HID_PAD + HID].set(W.T)
        bp = jnp.zeros((1, PAIR_PAD), jnp.float32)
        bp = bp.at[0, :HID].set(b)
        bp = bp.at[0, HID_PAD:HID_PAD + HID].set(b)
        return Wp, bp

    W1p, b1p = pair_in(W1, b1, Ds)
    W2p, b2p = pair_in(W2, b2, Da)

    W3p = jnp.zeros((PAIR_PAD, MID_PAD), jnp.float32)
    W3p = W3p.at[:HID, :MID].set(W3.T[:HID])                      # first 100 feats
    W3p = W3p.at[HID_PAD:HID_PAD + HID, :MID].set(W3.T[HID:])     # last 100 feats
    b3p = jnp.zeros((1, MID_PAD), jnp.float32).at[0, :MID].set(b3)

    W4p = jnp.zeros((MID_PAD, 1), jnp.float32).at[:MID, :].set(W4.T)
    b4p = b4.reshape(1, 1).astype(jnp.float32)
    return dict(W1p=W1p, b1p=b1p, W2p=W2p, b2p=b2p,
                W3p=W3p, b3p=b3p, W4p=W4p, b4p=b4p)


@jax.jit
def reward_model_forward(prep, s, a):
    """Fused Pallas forward (eval-mode dropout)."""
    B, Ds = s.shape
    _, Da = a.shape
    assert B % 2 == 0, "fused kernel requires an even batch"
    # TODO(synk): odd batch sizes make the original cat/reshape mix the last
    # state row with the first action row; not supported by this fused kernel.
    Bh = B // 2
    s2 = s.reshape(Bh, 2 * Ds)   # free contiguous reshape: row j = [s[2j], s[2j+1]]
    a2 = a.reshape(Bh, 2 * Da)

    tile = Bh if Bh <= MAX_TILE_ROWS else MAX_TILE_ROWS
    grid = (pl.cdiv(Bh, tile),)
    const = lambda i: (0, 0)     # weights/biases: VMEM-resident across the grid

    out = pl.pallas_call(
        _fused_kernel,
        out_shape=jax.ShapeDtypeStruct((2, Bh, 1), jnp.float32),
        grid=grid,
        in_specs=[
            pl.BlockSpec((tile, 2 * Ds), lambda i: (i, 0)),
            pl.BlockSpec((tile, 2 * Da), lambda i: (i, 0)),
            pl.BlockSpec((2 * Ds, PAIR_PAD), const),
            pl.BlockSpec((1, PAIR_PAD), const),
            pl.BlockSpec((2 * Da, PAIR_PAD), const),
            pl.BlockSpec((1, PAIR_PAD), const),
            pl.BlockSpec((PAIR_PAD, MID_PAD), const),
            pl.BlockSpec((1, MID_PAD), const),
            pl.BlockSpec((MID_PAD, 1), const),
            pl.BlockSpec((1, 1), const),
        ],
        out_specs=pl.BlockSpec((2, tile, 1), lambda i: (0, i, 0)),
        compiler_params=pltpu.CompilerParams(
            dimension_semantics=("parallel",)),
    )(s2, a2, prep["W1p"], prep["b1p"], prep["W2p"], prep["b2p"],
      prep["W3p"], prep["b3p"], prep["W4p"], prep["b4p"])

    # (2, B/2, 1) -> (B, 1): s-pair rows first, then a-pair rows (matches torch).
    return out.reshape(B, 1)


def reward_model_reference(raw, s, a):
    """Pure-JAX reference of the original forward (eval-mode dropout = identity)."""
    s1 = jnp.maximum(s @ raw["W1"].T + raw["b1"], 0.0)
    a1 = jnp.maximum(a @ raw["W2"].T + raw["b2"], 0.0)
    x = jnp.concatenate([s1, a1], axis=0).reshape(-1, 2 * HID)
    h = jnp.maximum(x @ raw["W3"].T + raw["b3"], 0.0)
    return (h @ raw["W4"].T + raw["b4"]).reshape(-1, 1)


def init_params(key, state_dim, action_dim):
    """Deterministic PyTorch-Linear-style init: U(-1/sqrt(fan_in), 1/sqrt(fan_in))."""
    keys = jax.random.split(key, 8)

    def lin(kw, kb, fan_in, fan_out):
        bound = 1.0 / float(fan_in) ** 0.5
        W = jax.random.uniform(kw, (fan_out, fan_in), jnp.float32, -bound, bound)
        b = jax.random.uniform(kb, (fan_out,), jnp.float32, -bound, bound)
        return W, b

    W1, b1 = lin(keys[0], keys[1], state_dim, HID)    # block1 Linear
    W2, b2 = lin(keys[2], keys[3], action_dim, HID)   # block2 Linear
    W3, b3 = lin(keys[4], keys[5], 2 * HID, MID)      # block3 Linear #1
    W4, b4 = lin(keys[6], keys[7], MID, 1)            # block3 Linear #2
    return dict(W1=W1, b1=b1, W2=W2, b2=b2, W3=W3, b3=b3, W4=W4, b4=b4)


if __name__ == "__main__":
    state_dim, action_dim, batch = 16, 8, 8

    key = jax.random.PRNGKey(0)
    k_params, k_s, k_a = jax.random.split(key, 3)
    raw = init_params(k_params, state_dim, action_dim)
    prep = prepare_params(raw)          # hoisted one-time weight repack

    s = jax.random.normal(k_s, (batch, state_dim), jnp.float32)
    a = jax.random.normal(k_a, (batch, action_dim), jnp.float32)

    out = jax.block_until_ready(reward_model_forward(prep, s, a))
    ref = jax.block_until_ready(reward_model_reference(raw, s, a))

    assert out.shape == (batch, 1), out.shape
    assert jnp.allclose(out, ref, atol=1e-4, rtol=1e-4), "mismatch vs reference"

    print("KERNEL_OK")
</pallas_src>

<mosaic_0001>
module attributes {stable_mosaic.version = 11 : i64} {
  func.func @_fused_kernel(%arg0: i32, %arg1: memref<4x32xf32, #tpu.memory_space<vmem>>, %arg2: memref<4x16xf32, #tpu.memory_space<vmem>>, %arg3: memref<32x256xf32, #tpu.memory_space<vmem>>, %arg4: memref<1x256xf32, #tpu.memory_space<vmem>>, %arg5: memref<16x256xf32, #tpu.memory_space<vmem>>, %arg6: memref<1x256xf32, #tpu.memory_space<vmem>>, %arg7: memref<256x128xf32, #tpu.memory_space<vmem>>, %arg8: memref<1x128xf32, #tpu.memory_space<vmem>>, %arg9: memref<128x1xf32, #tpu.memory_space<vmem>>, %arg10: memref<1x1xf32, #tpu.memory_space<vmem>>, %arg11: memref<2x4x1xf32, #tpu.memory_space<vmem>>) attributes {dimension_semantics = [#tpu.dimension_semantics<parallel>], iteration_bounds = array<i64: 1>, scalar_prefetch = 0 : i64, scratch_operands = 0 : i64, tpu.core_type = #tpu.core_type<tc>, window_params = [{transform_indices = @transform_0, window_bounds = array<i64: 4, 32>}, {transform_indices = @transform_1, window_bounds = array<i64: 4, 16>}, {pipeline_mode = #tpu.pipeline_mode<synchronous>, transform_indices = @transform_2, window_bounds = array<i64: 32, 256>}, {pipeline_mode = #tpu.pipeline_mode<synchronous>, transform_indices = @transform_3, window_bounds = array<i64: 1, 256>}, {pipeline_mode = #tpu.pipeline_mode<synchronous>, transform_indices = @transform_4, window_bounds = array<i64: 16, 256>}, {pipeline_mode = #tpu.pipeline_mode<synchronous>, transform_indices = @transform_5, window_bounds = array<i64: 1, 256>}, {pipeline_mode = #tpu.pipeline_mode<synchronous>, transform_indices = @transform_6, window_bounds = array<i64: 256, 128>}, {pipeline_mode = #tpu.pipeline_mode<synchronous>, transform_indices = @transform_7, window_bounds = array<i64: 1, 128>}, {pipeline_mode = #tpu.pipeline_mode<synchronous>, transform_indices = @transform_8, window_bounds = array<i64: 128, 1>}, {pipeline_mode = #tpu.pipeline_mode<synchronous>, transform_indices = @transform_9, window_bounds = array<i64: 1, 1>}, {transform_indices = @transform_10, window_bounds = array<i64: 2, 4, 1>}]} {
    %c0 = arith.constant 0 : index
    %c0_0 = arith.constant 0 : index
    %0 = vector.load %arg7[%c0, %c0_0] : memref<256x128xf32, #tpu.memory_space<vmem>>, vector<256x128xf32>
    %c0_1 = arith.constant 0 : index
    %c0_2 = arith.constant 0 : index
    %1 = vector.load %arg8[%c0_1, %c0_2] : memref<1x128xf32, #tpu.memory_space<vmem>>, vector<1x128xf32>
    %c0_3 = arith.constant 0 : index
    %c0_4 = arith.constant 0 : index
    %2 = vector.load %arg9[%c0_3, %c0_4] : memref<128x1xf32, #tpu.memory_space<vmem>>, vector<128x1xf32>
    %c0_5 = arith.constant 0 : index
    %c0_6 = arith.constant 0 : index
    %3 = vector.load %arg10[%c0_5, %c0_6] : memref<1x1xf32, #tpu.memory_space<vmem>>, vector<1x1xf32>
    %c0_7 = arith.constant 0 : index
    %c0_8 = arith.constant 0 : index
    %4 = vector.load %arg1[%c0_7, %c0_8] : memref<4x32xf32, #tpu.memory_space<vmem>>, vector<4x32xf32>
    %c0_9 = arith.constant 0 : index
    %c0_10 = arith.constant 0 : index
    %5 = vector.load %arg3[%c0_9, %c0_10] : memref<32x256xf32, #tpu.memory_space<vmem>>, vector<32x256xf32>
    %c0_11 = arith.constant 0 : index
    %c0_12 = arith.constant 0 : index
    %6 = vector.load %arg4[%c0_11, %c0_12] : memref<1x256xf32, #tpu.memory_space<vmem>>, vector<1x256xf32>
    %cst = arith.constant dense<0.000000e+00> : vector<4x256xf32>
    %7 = tpu.matmul %4, %5, %cst {dimension_numbers = #tpu.dot_dimension_numbers<[1], [0], [0], [1], [0, 0, 1, 1], [], []>} : vector<4x32xf32>, vector<32x256xf32>, vector<4x256xf32> -> vector<4x256xf32>
    %8 = vector.broadcast %6 : vector<1x256xf32> to vector<4x256xf32>
    %9 = arith.addf %7, %8 : vector<4x256xf32>
    %cst_13 = arith.constant 0.000000e+00 : f32
    %10 = vector.broadcast %cst_13 : f32 to vector<4x256xf32>
    %11 = arith.maximumf %9, %10 : vector<4x256xf32>
    %cst_14 = arith.constant dense<0.000000e+00> : vector<4x128xf32>
    %12 = tpu.matmul %11, %0, %cst_14 {dimension_numbers = #tpu.dot_dimension_numbers<[1], [0], [0], [1], [0, 0, 1, 1], [], []>} : vector<4x256xf32>, vector<256x128xf32>, vector<4x128xf32> -> vector<4x128xf32>
    %13 = vector.broadcast %1 : vector<1x128xf32> to vector<4x128xf32>
    %14 = arith.addf %12, %13 : vector<4x128xf32>
    %cst_15 = arith.constant 0.000000e+00 : f32
    %15 = vector.broadcast %cst_15 : f32 to vector<4x128xf32>
    %16 = arith.maximumf %14, %15 : vector<4x128xf32>
    %cst_16 = arith.constant dense<0.000000e+00> : vector<4x1xf32>
    %17 = tpu.matmul %16, %2, %cst_16 {dimension_numbers = #tpu.dot_dimension_numbers<[1], [0], [0], [1], [0, 0, 1, 1], [], []>} : vector<4x128xf32>, vector<128x1xf32>, vector<4x1xf32> -> vector<4x1xf32>
    %18 = vector.broadcast %3 : vector<1x1xf32> to vector<4x1xf32>
    %19 = arith.addf %17, %18 : vector<4x1xf32>
    %c0_17 = arith.constant 0 : index
    %c0_18 = arith.constant 0 : index
    %c0_19 = arith.constant 0 : index
    %20 = vector.load %arg11[%c0_17, %c0_18, %c0_19] : memref<2x4x1xf32, #tpu.memory_space<vmem>>, vector<1x4x1xf32>
    %21 = vector.shape_cast %20 : vector<1x4x1xf32> to vector<4x1xf32>
    %22 = vector.shape_cast %19 : vector<4x1xf32> to vector<1x4x1xf32>
    tpu.vector_store %arg11[%c0_17, %c0_18, %c0_19], %22 {strides = array<i32>} : memref<2x4x1xf32, #tpu.memory_space<vmem>>, vector<1x4x1xf32>,
    %c0_20 = arith.constant 0 : index
    %c0_21 = arith.constant 0 : index
    %23 = vector.load %arg2[%c0_20, %c0_21] : memref<4x16xf32, #tpu.memory_space<vmem>>, vector<4x16xf32>
    %c0_22 = arith.constant 0 : index
    %c0_23 = arith.constant 0 : index
    %24 = vector.load %arg5[%c0_22, %c0_23] : memref<16x256xf32, #tpu.memory_space<vmem>>, vector<16x256xf32>
    %c0_24 = arith.constant 0 : index
    %c0_25 = arith.constant 0 : index
    %25 = vector.load %arg6[%c0_24, %c0_25] : memref<1x256xf32, #tpu.memory_space<vmem>>, vector<1x256xf32>
    %cst_26 = arith.constant dense<0.000000e+00> : vector<4x256xf32>
    %26 = tpu.matmul %23, %24, %cst_26 {dimension_numbers = #tpu.dot_dimension_numbers<[1], [0], [0], [1], [0, 0, 1, 1], [], []>} : vector<4x16xf32>, vector<16x256xf32>, vector<4x256xf32> -> vector<4x256xf32>
    %27 = vector.broadcast %25 : vector<1x256xf32> to vector<4x256xf32>
    %28 = arith.addf %26, %27 : vector<4x256xf32>
    %cst_27 = arith.constant 0.000000e+00 : f32
    %29 = vector.broadcast %cst_27 : f32 to vector<4x256xf32>
    %30 = arith.maximumf %28, %29 : vector<4x256xf32>
    %cst_28 = arith.constant dense<0.000000e+00> : vector<4x128xf32>
    %31 = tpu.matmul %30, %0, %cst_28 {dimension_numbers = #tpu.dot_dimension_numbers<[1], [0], [0], [1], [0, 0, 1, 1], [], []>} : vector<4x256xf32>, vector<256x128xf32>, vector<4x128xf32> -> vector<4x128xf32>
    %32 = vector.broadcast %1 : vector<1x128xf32> to vector<4x128xf32>
    %33 = arith.addf %31, %32 : vector<4x128xf32>
    %cst_29 = arith.constant 0.000000e+00 : f32
    %34 = vector.broadcast %cst_29 : f32 to vector<4x128xf32>
    %35 = arith.maximumf %33, %34 : vector<4x128xf32>
    %cst_30 = arith.constant dense<0.000000e+00> : vector<4x1xf32>
    %36 = tpu.matmul %35, %2, %cst_30 {dimension_numbers = #tpu.dot_dimension_numbers<[1], [0], [0], [1], [0, 0, 1, 1], [], []>} : vector<4x128xf32>, vector<128x1xf32>, vector<4x1xf32> -> vector<4x1xf32>
    %37 = vector.broadcast %3 : vector<1x1xf32> to vector<4x1xf32>
    %38 = arith.addf %36, %37 : vector<4x1xf32>
    %c1 = arith.constant 1 : index
    %c0_31 = arith.constant 0 : index
    %c0_32 = arith.constant 0 : index
    %39 = vector.load %arg11[%c1, %c0_31, %c0_32] : memref<2x4x1xf32, #tpu.memory_space<vmem>>, vector<1x4x1xf32>
    %40 = vector.shape_cast %39 : vector<1x4x1xf32> to vector<4x1xf32>
    %41 = vector.shape_cast %38 : vector<4x1xf32> to vector<1x4x1xf32>
    tpu.vector_store %arg11[%c1, %c0_31, %c0_32], %41 {strides = array<i32>} : memref<2x4x1xf32, #tpu.memory_space<vmem>>, vector<1x4x1xf32>,
    return
  }
  func.func @transform_0(%arg0: i32) -> (i32, i32) {
    %c0_i32 = arith.constant 0 : i32
    %c0_i32_0 = arith.constant 0 : i32
    return %arg0, %c0_i32 : i32, i32
  }
  func.func @transform_1(%arg0: i32) -> (i32, i32) {
    %c0_i32 = arith.constant 0 : i32
    %c0_i32_0 = arith.constant 0 : i32
    return %arg0, %c0_i32 : i32, i32
  }
  func.func @transform_2(%arg0: i32) -> (i32, i32) {
    %c0_i32 = arith.constant 0 : i32
    %c0_i32_0 = arith.constant 0 : i32
    %c0_i32_1 = arith.constant 0 : i32
    return %c0_i32, %c0_i32_0 : i32, i32
  }
  func.func @transform_3(%arg0: i32) -> (i32, i32) {
    %c0_i32 = arith.constant 0 : i32
    %c0_i32_0 = arith.constant 0 : i32
    %c0_i32_1 = arith.constant 0 : i32
    return %c0_i32, %c0_i32_0 : i32, i32
  }
  func.func @transform_4(%arg0: i32) -> (i32, i32) {
    %c0_i32 = arith.constant 0 : i32
    %c0_i32_0 = arith.constant 0 : i32
    %c0_i32_1 = arith.constant 0 : i32
    return %c0_i32, %c0_i32_0 : i32, i32
  }
  func.func @transform_5(%arg0: i32) -> (i32, i32) {
    %c0_i32 = arith.constant 0 : i32
    %c0_i32_0 = arith.constant 0 : i32
    %c0_i32_1 = arith.constant 0 : i32
    return %c0_i32, %c0_i32_0 : i32, i32
  }
  func.func @transform_6(%arg0: i32) -> (i32, i32) {
    %c0_i32 = arith.constant 0 : i32
    %c0_i32_0 = arith.constant 0 : i32
    %c0_i32_1 = arith.constant 0 : i32
    return %c0_i32, %c0_i32_0 : i32, i32
  }
  func.func @transform_7(%arg0: i32) -> (i32, i32) {
    %c0_i32 = arith.constant 0 : i32
    %c0_i32_0 = arith.constant 0 : i32
    %c0_i32_1 = arith.constant 0 : i32
    return %c0_i32, %c0_i32_0 : i32, i32
  }
  func.func @transform_8(%arg0: i32) -> (i32, i32) {
    %c0_i32 = arith.constant 0 : i32
    %c0_i32_0 = arith.constant 0 : i32
    %c0_i32_1 = arith.constant 0 : i32
    return %c0_i32, %c0_i32_0 : i32, i32
  }
  func.func @transform_9(%arg0: i32) -> (i32, i32) {
    %c0_i32 = arith.constant 0 : i32
    %c0_i32_0 = arith.constant 0 : i32
    %c0_i32_1 = arith.constant 0 : i32
    return %c0_i32, %c0_i32_0 : i32, i32
  }
  func.func @transform_10(%arg0: i32) -> (i32, i32, i32) {
    %c0_i32 = arith.constant 0 : i32
    %c0_i32_0 = arith.constant 0 : i32
    %c0_i32_1 = arith.constant 0 : i32
    return %c0_i32, %arg0, %c0_i32_0 : i32, i32, i32
  }
}

</mosaic_0001>

<bundles_post_ra>
// kernel: reward_model_forward.1
= control target key start
LH: loop header
LB: loop body
LE: loop exit
PB: predicated region body
PF: predicated region fallthrough
CT: control target
= control target key end

     0   :  { %s1220_s0 = inlined_call_operand.vmem [shape: f32[4,32], index: 0, kind: input, shape index: {}]   ;;  %s1221_s1 = inlined_call_operand.vmem [shape: f32[4,16], index: 1, kind: input, shape index: {}]   ;;  %s1222_s2 = inlined_call_operand.vmem [shape: f32[32,256], index: 2, kind: input, shape index: {}]   ;;  %s1223_s3 = inlined_call_operand.vmem [shape: f32[1,256], index: 3, kind: input, shape index: {}]   ;;  %s1224_s4 = inlined_call_operand.vmem [shape: f32[16,256], index: 4, kind: input, shape index: {}]   ;;  %s1225_s5 = inlined_call_operand.vmem [shape: f32[1,256], index: 5, kind: input, shape index: {}]   ;;  %s1226_s6 = inlined_call_operand.hbm [shape: f32[256,128], index: 6, kind: input, shape index: {}]   ;;  %s1227_s7 = inlined_call_operand.vmem [shape: f32[1,128], index: 7, kind: input, shape index: {}]   ;;  %s1228_s8 = inlined_call_operand.vmem [shape: f32[128,1], index: 8, kind: input, shape index: {}]   ;;  %s1229_s9 = inlined_call_operand.<no memory space> [shape: f32[1,1], index: 9, kind: input, shape index: {}]   ;;  %s1230_s10 = inlined_call_operand.vmem [shape: f32[2,4,1], index: 10, kind: output, shape index: {}]  }
   0x1   :  { %v15_v0 = vstv %s1229_s9 }
   0x2   :  { %16 = vst [vmem:[#allocation2] sm:$0x1] %v15_v0 }
   0x3   :  { %17 = vsyncpa [#allocation4], 0  ;;  %s929_s15 = smov [#allocation3]   ;;  %s905_s19 = scalar_lea.hbm %s1226_s6, 4096 }
   0x4   :  { %s35_s16 = sshll.u32 %s929_s15, 4  ;;  %p906_p0 = scmp.ne.s32.totalorder %s1226_s6, %s905_s19  ;;  %s36_s16 = int_to_ptr.vmem [resolvable:$true] %s35_s16 }
   0x5   :  { %p909_p1 = scmp.lt.u32.totalorder %s905_s19, %s1226_s6 }
   0x7   :  { %p911_p2 = pnand %p909_p1, %p906_p0 }
   0x9   :  { %914 = shalt.err (!%p911_p2)
}
   0xa   :  { %s915_s9 = scalar_lea.vmem %s36_s16, 4096  ;;  %p920_p4 = scmp.lt.s32.totalorder %s36_s16, %s36_s16 }
   0xb   :  { %p916_p3 = scmp.ne.s32.totalorder %s36_s16, %s915_s9  ;;  %p921_p5 = scmp.lt.s32.totalorder %s915_s9, %s915_s9 }
   0xd   :  { %p922_p6 = por %p921_p5, %p920_p4 }
   0xf   :  { %p923_p7 = pnand %p922_p6, %p916_p3 }
  0x11   :  { %926 = shalt.err (!%p923_p7)
}
  0x12   :  { %s930_s24 = smov 128   ;;  %s931_s25 = smov 8  }
  0x13   :  { %41 = dma.hbm_to_vmem [thread:$0]  %s1226_s6, 4096, %s36_s16, [#allocation4], %s930_s24, %s930_s24, %s931_s25  }
  0x14   :  { %927 = dma.done.wait [#allocation4], 4096  }
  0x15   :  { %928 = vsyncadd [#allocation4], 4294963200  ;;  %v932_v1 = vmov 0.0   ;;  %v103_v2 = vld [vmem:[%s1222_s2 + $0x8] sm:$0xff]  ;;  %v105_v3 = vld [vmem:[%s1222_s2 + $0x18] sm:$0xff]  ;;  %vm122_vm0 = vcmask 261120  }
  0x16   :  { %190 = vmatprep.mubr.f32.mxu0 %v932_v1  ;;  %v102_v4 = vld [vmem:[%s1222_s2] sm:$0xff]  ;;  %v775_v5 = vpack.c.bf16 %v105_v3, %v103_v2  ;;  %v104_v6 = vld [vmem:[%s1222_s2 + $0x10] sm:$0xff]  ;;  %v107_v7 = vld [vmem:[%s1222_s2 + $0x28] sm:$0xff]  ;;  %vm371_vm1 = vcmask 130048   ;;  %vm934_vm2 = vmmov 0   ;;  %vm352_vm3 = vcmask 3072  }
  0x17   :  { %v109_v8 = vld [vmem:[%s1222_s2 + $0x38] sm:$0xff]  ;;  %v777_v9 = vpack.c.bf16 %v104_v6, %v102_v4  ;;  %v106_v11 = vld [vmem:[%s1222_s2 + $0x20] sm:$0xff]  ;;  %v108_v12 = vld [vmem:[%s1222_s2 + $0x30] sm:$0xff] }
  0x18   :  { %v779_v10 = vpack.c.bf16 %v109_v8, %v107_v7  ;;  %776 = vmatprep.subr.bf16.mxu0 %v775_v5  ;;  %v67_v13 = vld [vmem:[#allocation3 + $0x80] sm:$0xff]  ;;  %v68_v14 = vld [vmem:[#allocation3 + $0x88] sm:$0xff]  ;;  %v781_v16 = vpack.c.bf16 %v108_v12, %v106_v11  ;;  %v69_v19 = vld [vmem:[#allocation3 + $0x90] sm:$0xff]  ;;  %v933_v5 = vmov 0.0|0.0  }
  0x19   :  { %v51_v15 = vld [vmem:[#allocation3] sm:$0xff]  ;;  %778 = vmatpush1.bf16.msra.mxu0 %v777_v9  ;;  %v1030_v17 = vpack.c.bf16 %v68_v14, %v67_v13  ;;  %v52_v18 = vld [vmem:[#allocation3 + $0x8] sm:$0xff]  ;;  %v70_v20 = vld [vmem:[#allocation3 + $0x98] sm:$0xff] }
  0x1a   :  { %780 = vmatprep.subr.bf16.mxu0 %v779_v10  ;;  %v1032_v21 = vpack.c.bf16 %v52_v18, %v51_v15  ;;  %v1034_v22 = vpack.c.bf16 %v70_v20, %v69_v19  ;;  %v53_v23 = vld [vmem:[#allocation3 + $0x10] sm:$0xff]  ;;  %v54_v24 = vld [vmem:[#allocation3 + $0x18] sm:$0xff]  ;;  %v71_v25 = vld [vmem:[#allocation3 + $0xa0] sm:$0xff] }
  0x1b   :  { %784 = vmatprep.subr.bf16.mxu1 %v1030_v17  ;;  %v72_v26 = vld [vmem:[#allocation3 + $0xa8] sm:$0xff]  ;;  %v1038_v27 = vpack.c.bf16 %v54_v24, %v53_v23  ;;  %v101_v28 = vld [vmem:[%s1220_s0] sm:$0xf]  ;;  %v73_v32 = vld [vmem:[#allocation3 + $0xb0] sm:$0xff] }
  0x1c   :  { %786 = vmatpush3.bf16.msra.mxu1 %v1032_v21  ;;  %v1044_v29 = vpack.c.bf16 %v72_v26, %v71_v25  ;;  %v55_v30 = vld [vmem:[#allocation3 + $0x20] sm:$0xff]  ;;  %v56_v31 = vld [vmem:[#allocation3 + $0x28] sm:$0xff]  ;;  %v74_v33 = vld [vmem:[#allocation3 + $0xb8] sm:$0xff]  ;;  %v112_v25 = vlaneseq }
  0x1d   :  { %782 = vmatpush1.bf16.msra.mxu0 %v781_v16  ;;  %788 = vmatprep.subr.bf16.mxu1 %v1034_v22  ;;  %v1047_v34 = vpack.c.bf16 %v56_v31, %v55_v30  ;;  %v1050_v35 = vpack.c.bf16 %v74_v33, %v73_v32  ;;  %v57_v36 = vld [vmem:[#allocation3 + $0x30] sm:$0xff]  ;;  %v58_v37 = vld [vmem:[#allocation3 + $0x38] sm:$0xff]  ;;  %v75_v38 = vld [vmem:[#allocation3 + $0xc0] sm:$0xff] }
  0x1e   :  { %v76_v39 = vld [vmem:[#allocation3 + $0xc8] sm:$0xff]  ;;  %v1053_v40 = vpack.c.bf16 %v58_v37, %v57_v36  ;;  %v59_v42 = vld [vmem:[#allocation3 + $0x40] sm:$0xff]  ;;  %v77_v44 = vld [vmem:[#allocation3 + $0xd0] sm:$0xff]  ;;  %815 = vmatprep.subr.bf16.mxu0 %v933_v5  ;;  %v113_v26 = vshrl.u32 %v112_v25, 7 }
  0x1f   :  { %v1056_v41 = vpack.c.bf16 %v76_v39, %v75_v38  ;;  %v60_v43 = vld [vmem:[#allocation3 + $0x48] sm:$0xff]  ;;  %v78_v45 = vld [vmem:[#allocation3 + $0xd8] sm:$0xff]  ;;  %v61_v48 = vld [vmem:[#allocation3 + $0x50] sm:$0xff] }
  0x20   :  { %596 = vmatmul.mubr.msk.f32.vlgmr.msra.gmra.mrb[0].mxu0 %vm122_vm0, %v101_v28  ;;  %790 = vmatpush3.bf16.msra.mxu1 %v1038_v27  ;;  %v1059_v46 = vpack.c.bf16 %v60_v43, %v59_v42  ;;  %v1062_v47 = vpack.c.bf16 %v78_v45, %v77_v44  ;;  %v62_v49 = vld [vmem:[#allocation3 + $0x58] sm:$0xff]  ;;  %v79_v50 = vld [vmem:[#allocation3 + $0xe0] sm:$0xff]  ;;  %v80_v51 = vld [vmem:[#allocation3 + $0xe8] sm:$0xff]  ;;  %v114_v28 = vsub.s32 0, %v113_v26  ;;  %v118_v31 = vsub.s32 1, %v113_v26 }
  0x21   :  { %792 = vmatprep.subr.bf16.mxu1 %v1044_v29  ;;  %v1065_v52 = vpack.c.bf16 %v62_v49, %v61_v48  ;;  %v1068_v53 = vpack.c.bf16 %v80_v51, %v79_v50  ;;  %v63_v54 = vld [vmem:[#allocation3 + $0x60] sm:$0xff]  ;;  %v64_v55 = vld [vmem:[#allocation3 + $0x68] sm:$0xff]  ;;  %v81_v57 = vld [vmem:[#allocation3 + $0xf0] sm:$0xff]  ;;  %737 = vmatprep.mubr.msk.f32.mxu0 %vm934_vm2, %v932_v1 }
  0x22   :  { %v1071_v56 = vpack.c.bf16 %v64_v55, %v63_v54  ;;  %v82_v58 = vld [vmem:[#allocation3 + $0xf8] sm:$0xff]  ;;  %v65_v60 = vld [vmem:[#allocation3 + $0x70] sm:$0xff]  ;;  %v356_v63 = vld [vmem:[%s1224_s4 + $0x8] sm:$0xff] }
  0x23   :  { %v1075_v59 = vpack.c.bf16 %v82_v58, %v81_v57  ;;  %v66_v61 = vld [vmem:[#allocation3 + $0x78] sm:$0xff]  ;;  %v85_v4 = vld [vmem:[%s1228_s8 + $0x8] sm:$0xff]  ;;  %v86_v7 = vld [vmem:[%s1228_s8 + $0x10] sm:$0xff] }
  0x24   :  { %794 = vmatpush3.bf16.msra.mxu1 %v1047_v34  ;;  %v1077_v62 = vpack.c.bf16 %v66_v61, %v65_v60  ;;  %v358_v0 = vld [vmem:[%s1224_s4 + $0x18] sm:$0xff]  ;;  %v84_v3 = vld [vmem:[%s1228_s8] sm:$0xff]  ;;  %v89_v11 = vld [vmem:[%s1228_s8 + $0x28] sm:$0xff] }
  0x25   :  { %796 = vmatprep.subr.bf16.mxu1 %v1050_v35  ;;  %v839_v2 = vpack.c.bf16 %v358_v0, %v356_v63  ;;  %v1094_v6 = vpack.c.bf16 %v85_v4, %v84_v3  ;;  %v87_v8 = vld [vmem:[%s1228_s8 + $0x18] sm:$0xff]  ;;  %v88_v10 = vld [vmem:[%s1228_s8 + $0x20] sm:$0xff]  ;;  %v90_v13 = vld [vmem:[%s1228_s8 + $0x30] sm:$0xff] }
  0x26   :  { %v1103_v9 = vpack.c.bf16 %v87_v8, %v86_v7  ;;  %v1113_v12 = vpack.c.bf16 %v89_v11, %v88_v10  ;;  %v91_v14 = vld [vmem:[%s1228_s8 + $0x38] sm:$0xff]  ;;  %v92_v16 = vld [vmem:[%s1228_s8 + $0x40] sm:$0xff]  ;;  %v93_v18 = vld [vmem:[%s1228_s8 + $0x48] sm:$0xff] }
  0x27   :  { %817 = vmatpush3.bf16.msra.mxu0 %v1094_v6  ;;  %v1123_v15 = vpack.c.bf16 %v91_v14, %v90_v13  ;;  %v1133_v19 = vpack.c.bf16 %v93_v18, %v92_v16  ;;  %v94_v20 = vld [vmem:[%s1228_s8 + $0x50] sm:$0xff]  ;;  %v95_v23 = vld [vmem:[%s1228_s8 + $0x58] sm:$0xff]  ;;  %v110_v30 = vld [vmem:[%s1223_s3] sm:$0x3] }
  0x28   :  { %798 = vmatpush3.bf16.msra.mxu1 %v1053_v40  ;;  %818 = vmatprep.subr.bf16.mxu0 %v933_v5  ;;  %v1143_v24 = vpack.c.bf16 %v95_v23, %v94_v20  ;;  %v115_v32 = vrot.slane %v110_v30, %v114_v28  ;;  %v119_v33 = vrot.slane %v110_v30, %v118_v31  ;;  %v355_v39 = vld [vmem:[%s1224_s4] sm:$0xff]  ;;  %v357_v42 = vld [vmem:[%s1224_s4 + $0x10] sm:$0xff] }
  0x29   :  { %800 = vmatprep.subr.bf16.mxu1 %v1056_v41  ;;  %v841_v45 = vpack.c.bf16 %v357_v42, %v355_v39  ;;  %v354_v49 = vld [vmem:[%s1221_s1] sm:$0xf] }
  0x2b   :  { %820 = vmatpush3.bf16.msra.mxu0 %v1103_v9 }
  0x2c   :  { %802 = vmatpush3.bf16.msra.mxu1 %v1059_v46  ;;  %821 = vmatprep.subr.bf16.mxu0 %v933_v5 }
  0x2d   :  { %804 = vmatprep.subr.bf16.mxu1 %v1062_v47 }
  0x2f   :  { %823 = vmatpush3.bf16.msra.mxu0 %v1113_v12 }
  0x30   :  { %806 = vmatpush3.bf16.msra.mxu1 %v1065_v52  ;;  %824 = vmatprep.subr.bf16.mxu0 %v933_v5 }
  0x31   :  { %808 = vmatprep.subr.bf16.mxu1 %v1068_v53 }
  0x33   :  { %826 = vmatpush3.bf16.msra.mxu0 %v1123_v15 }
  0x34   :  { %810 = vmatpush3.bf16.msra.mxu1 %v1071_v56  ;;  %827 = vmatprep.subr.bf16.mxu0 %v933_v5 }
  0x35   :  { %812 = vmatprep.subr.bf16.mxu1 %v1075_v59 }
  0x37   :  { %829 = vmatpush3.bf16.msra.mxu0 %v1133_v19 }
  0x38   :  { %814 = vmatpush3.bf16.msra.mxu1 %v1077_v62  ;;  %830 = vmatprep.subr.bf16.mxu0 %v933_v5 }
  0x39   :  { %840 = vmatprep.subr.bf16.mxu1 %v839_v2 }
  0x3b   :  { %832 = vmatpush3.bf16.msra.mxu0 %v1143_v24 }
  0x3c   :  { %833 = vmatprep.subr.bf16.mxu0 %v933_v5 }
  0xf3   :  { %v192_v36 = vpop.f32.mrb[0].mxu0 }
  0xf4   :  { %v193_v37 = vadd.f32 %v192_v36, %v115_v32  ;;  %v194_v38 = vpop.f32.mrb[1].mxu0 }
  0xf5   :  { %v195_v43 = vadd.f32 %v194_v38, %v119_v33 }
  0xf6   :  { %v197_v48 = vmax.f32 %v193_v37, 0.0 }
  0xf7   :  { %v198_v44 = vmax.f32 %v195_v43, 0.0 }
  0xf9   :  { %269 = vmatprep.mubr.f32.mxu1 %v198_v44 }
  0xfa   :  { %270 = vmatmul.mubr.f32.vlgmr.msra.gmra.mrb[0].mxu1 %v197_v48 }
  0xfb   :  { %842 = vmatpush1.bf16.msra.mxu1 %v841_v45  ;;  %439 = vmatprep.mubr.f32.mxu1 %v932_v1 }
  0xfc   :  { %844 = vmatprep.subr.bf16.mxu1 %v1030_v17  ;;  %v96_v17 = vld [vmem:[%s1228_s8 + $0x60] sm:$0xff] }
  0xfe   :  { %599 = vmatmul.mubr.msk.f32.vlgmr.msra.gmra.mrb[2].mxu1 %vm371_vm1, %v354_v49 }
  0xff   :  { %846 = vmatpush3.bf16.msra.mxu1 %v1032_v21  ;;  %v97_v21 = vld [vmem:[%s1228_s8 + $0x68] sm:$0xff] }
 0x100   :  { %848 = vmatprep.subr.bf16.mxu1 %v1034_v22  ;;  %v834_v22 = vpack.c.bf16 %v97_v21, %v96_v17 }
 0x102   :  { %835 = vmatpush3.bf16.msra.mxu0 %v834_v22 }
 0x103   :  { %850 = vmatpush3.bf16.msra.mxu1 %v1038_v27  ;;  %836 = vmatprep.subr.bf16.mxu0 %v933_v5  ;;  %v98_v27 = vld [vmem:[%s1228_s8 + $0x70] sm:$0xff] }
 0x104   :  { %852 = vmatprep.subr.bf16.mxu1 %v1044_v29  ;;  %v99_v29 = vld [vmem:[%s1228_s8 + $0x78] sm:$0xff] }
 0x107   :  { %854 = vmatpush3.bf16.msra.mxu1 %v1047_v34  ;;  %v837_v34 = vpack.c.bf16 %v99_v29, %v98_v27 }
 0x108   :  { %856 = vmatprep.subr.bf16.mxu1 %v1050_v35  ;;  %v359_v35 = vld [vmem:[%s1225_s5] sm:$0x3] }
 0x109   :  { %838 = vmatpush3.bf16.msra.mxu0 %v837_v34  ;;  %v368_v51 = vrot.slane %v359_v35, %v118_v31 }
 0x10a   :  { %875 = vmatprep.subr.bf16.mxu0 %v933_v5 }
 0x10b   :  { %858 = vmatpush3.bf16.msra.mxu1 %v1053_v40 }
 0x10c   :  { %860 = vmatprep.subr.bf16.mxu1 %v1056_v41  ;;  %v597_v41 = vld [vmem:[%s1227_s7] ss:$0 sm:$0xff] }
 0x10f   :  { %862 = vmatpush3.bf16.msra.mxu1 %v1059_v46 }
 0x110   :  { %864 = vmatprep.subr.bf16.mxu1 %v1062_v47  ;;  %v364_v47 = vrot.slane %v359_v35, %v114_v28 }
 0x113   :  { %866 = vmatpush3.bf16.msra.mxu1 %v1065_v52 }
 0x114   :  { %868 = vmatprep.subr.bf16.mxu1 %v1068_v53 }
 0x117   :  { %870 = vmatpush3.bf16.msra.mxu1 %v1071_v56 }
 0x118   :  { %872 = vmatprep.subr.bf16.mxu1 %v1075_v59 }
 0x11b   :  { %874 = vmatpush3.bf16.msra.mxu1 %v1077_v62 }
 0x1cd   :  { %v633_v40 = vpop.f32.mrb[0].mxu1 }
 0x1ce   :  { %v634_v46 = vpop.f32.mrb[1].mxu1 }
 0x1cf   :  { %v635_v50 = vadd.f32 %v634_v46, %v633_v40 }
 0x1d1   :  { %v272_v52 = vadd.f32 %v635_v50, %v597_v41  ;;  %v441_v53 = vpop.f32.mrb[2].mxu1 }
 0x1d2   :  { %v442_v54 = vadd.f32 %v441_v53, %v364_v47  ;;  %v443_v55 = vpop.f32.mrb[3].mxu1 }
 0x1d3   :  { %v275_v56 = vmax.f32 %v272_v52, 0.0  ;;  %v444_v57 = vadd.f32 %v443_v55, %v368_v51 }
 0x1d4   :  { %v446_v59 = vmax.f32 %v442_v54, 0.0 }
 0x1d5   :  { %v447_v58 = vmax.f32 %v444_v57, 0.0  ;;  %738 = vmatmul.mubr.f32.vlgmr.msra.gmra.mrb[2].mxu0 %v275_v56 }
 0x1d6   :  { %877 = vmatpush3.bf16.msra.mxu0 %v1094_v6  ;;  %772 = vmatprep.mubr.msk.f32.mxu0 %vm934_vm2, %v932_v1  ;;  %v598_v1 = vld [vmem:[#allocation2] ss:$0 sm:$0xff] }
 0x1d7   :  { %512 = vmatprep.mubr.f32.mxu1 %v447_v58  ;;  %878 = vmatprep.subr.bf16.mxu0 %v933_v5 }
 0x1d8   :  { %513 = vmatmul.mubr.f32.vlgmr.msra.gmra.mrb[4].mxu1 %v446_v59 }
 0x1da   :  { %880 = vmatpush3.bf16.msra.mxu0 %v1103_v9 }
 0x1db   :  { %881 = vmatprep.subr.bf16.mxu0 %v933_v5 }
 0x1de   :  { %883 = vmatpush3.bf16.msra.mxu0 %v1113_v12 }
 0x1df   :  { %884 = vmatprep.subr.bf16.mxu0 %v933_v5 }
 0x1e2   :  { %886 = vmatpush3.bf16.msra.mxu0 %v1123_v15 }
 0x1e3   :  { %887 = vmatprep.subr.bf16.mxu0 %v933_v5 }
 0x1e6   :  { %889 = vmatpush3.bf16.msra.mxu0 %v1133_v19 }
 0x1e7   :  { %890 = vmatprep.subr.bf16.mxu0 %v933_v5 }
 0x1ea   :  { %892 = vmatpush3.bf16.msra.mxu0 %v1143_v24 }
 0x1eb   :  { %893 = vmatprep.subr.bf16.mxu0 %v933_v5 }
 0x1ee   :  { %895 = vmatpush3.bf16.msra.mxu0 %v834_v22 }
 0x1ef   :  { %896 = vmatprep.subr.bf16.mxu0 %v933_v5 }
 0x1f2   :  { %898 = vmatpush3.bf16.msra.mxu0 %v837_v34 }
 0x2a8   :  { %v348_v60 = vpop.f32.mrb[2].mxu0 }
 0x2a9   :  { %v349_v61 = vadd.f32 %v598_v1, %v348_v60  ;;  %v739_v62 = vpop.f32.mrb[3].mxu0 }
 0x2ab   :  { %353 = vst.msk [vmem:[%s1230_s10] sm:$0xf] %vm352_vm3, %v349_v61  ;;  %v685_v63 = vpop.f32.mrb[4].mxu1 }
 0x2ac   :  { %v686_v0 = vpop.f32.mrb[5].mxu1 }
 0x2ad   :  { %v687_v2 = vadd.f32 %v686_v0, %v685_v63 }
 0x2af   :  { %v515_v3 = vadd.f32 %v687_v2, %v597_v41 }
 0x2b1   :  { %v518_v4 = vmax.f32 %v515_v3, 0.0 }
 0x2b3   :  { %773 = vmatmul.mubr.f32.vlgmr.msra.gmra.mrb[4].mxu0 %v518_v4 }
 0x386   :  { %v585_v6 = vpop.f32.mrb[4].mxu0 }
 0x387   :  { %v586_v7 = vadd.f32 %v598_v1, %v585_v6  ;;  %v774_v8 = vpop.f32.mrb[5].mxu0 }
 0x389   :  { %600 = vst.msk [vmem:[%s1230_s10 + $0x4] sm:$0xf] %vm352_vm3, %v586_v7 }
 0x38a   :  { %595 = vsyncpa [#allocation4], 1 }

</bundles_post_ra>
